<compile_context>
chip_gen: v5e
topology: v5e:2x2
jax: 0.10.0
libtpu: 0.0.40
codegen_flags: <defaults>
</compile_context>

<pallas_src>
import functools
import math

import numpy as np
import jax
import jax.numpy as jnp
from jax.experimental import pallas as pl
from jax.experimental.pallas import tpu as pltpu


def spline_attention_kernel(x_ref, w_ref, s_ref, c_ref, out_ref, attn_ref, *,
                            num_heads, hidden_size):
    H, D = num_heads, hidden_size
    HD = H * D

    x = x_ref[...]                                  # (TILE_M, in+1): ones column folds the bias
    # One fused MXU matmul produces: [ q*scale | k_rep_0..k_rep_{H-1} | v_rep_0..v_rep_{H-1} ]
    # where k_rep_g[m, h*D+d] == k[m, g*D+d] (group g replicated over all head slots).
    proj = jnp.dot(x, w_ref[...], preferred_element_type=jnp.float32)   # (TILE_M, (1+2H)*HD)

    q = proj[:, :HD]                                # (TILE_M, HD), 1/sqrt(D) already folded in
    seg = s_ref[...]                                # (HD, HP) 0/1 segment-sum matrix

    # Scores: t[g][m, h] = sum_d q[m, h*D+d] * k[m, g*D+d]
    # Full-128-lane VPU product + tiny MXU segment reduction (no XLU reductions).
    t = []
    for g in range(H):
        k_rep = proj[:, (1 + g) * HD:(2 + g) * HD]            # lane-aligned 128-wide slice
        t.append(jnp.dot(q * k_rep, seg, preferred_element_type=jnp.float32))  # (TILE_M, HP)

    # Softmax over g: purely elementwise across the H narrow slabs (no cross-lane ops).
    m = t[0]
    for g in range(1, H):
        m = jnp.maximum(m, t[g])
    e = [jnp.exp(t[g] - m) for g in range(H)]
    denom = e[0]
    for g in range(1, H):
        denom = denom + e[g]
    inv = 1.0 / denom                               # exact: attention weights sum to 1
    wgt = [e[g] * inv for g in range(H)]            # wgt[g][m, h] = softmax weight h -> g

    # Attended values + lane-dense attention-weight slab.
    # c_ref[g] is (HP, HD+128):  cols [0,HD)  -> broadcast wgt[g][:,h] over lanes h*D..h*D+D-1
    #                            cols [HD,..) -> place wgt[g][:,h] at lane h*H+g (attn output)
    att = None
    attn = None
    for g in range(H):
        z = jnp.dot(wgt[g], c_ref[g], preferred_element_type=jnp.float32)   # (TILE_M, HD+128)
        v_rep = proj[:, (1 + H + g) * HD:(2 + H + g) * HD]
        contrib = z[:, :HD] * v_rep
        att = contrib if att is None else att + contrib
        a = z[:, HD:]
        attn = a if attn is None else attn + a

    out_ref[...] = att.astype(out_ref.dtype)        # (TILE_M, HD)   lane-dense
    attn_ref[...] = attn.astype(attn_ref.dtype)     # (TILE_M, 128)  lane-dense (cols >= H*H are 0)


def pack_params(wq_t, bq, wk_t, bk, wv_t, bv, *, num_heads, hidden_size):
    """One-time packing. Weights arrive pre-transposed: (input_size, H*D); biases (1, H*D).

    Produces the augmented fused weight (input_size+1, (1+2H)*H*D):
      * query columns pre-scaled by 1/sqrt(D),
      * K and V replicated per attended group g (so the kernel never permutes lanes),
      * last row is the packed bias (folded via a ones column on x)."""
    H, D = num_heads, hidden_size
    scale = 1.0 / math.sqrt(D)
    w_cols = [wq_t * scale]
    b_cols = [bq * scale]
    for src_w, src_b in ((wk_t, bk), (wv_t, bv)):
        for g in range(H):
            w_cols.append(jnp.tile(src_w[:, g * D:(g + 1) * D], (1, H)))
            b_cols.append(jnp.tile(src_b[:, g * D:(g + 1) * D], (1, H)))
    w = jnp.concatenate(w_cols, axis=1)             # (in, (1+2H)*HD)
    b = jnp.concatenate(b_cols, axis=1)             # (1,  (1+2H)*HD)
    return jnp.concatenate([w, b], axis=0)          # (in+1, (1+2H)*HD)


def make_constants(num_heads, hidden_size, attn_pad=128):
    """0/1 helper matrices (head dim padded to HP=8 sublanes for clean MXU operands)."""
    H, D = num_heads, hidden_size
    HD = H * D
    HP = max(8, ((H + 7) // 8) * 8)
    assert H * H <= attn_pad
    seg = np.zeros((HD, HP), np.float32)
    for h in range(H):
        seg[h * D:(h + 1) * D, h] = 1.0
    c = np.zeros((H, HP, HD + attn_pad), np.float32)
    for g in range(H):
        for h in range(H):
            c[g, h, h * D:(h + 1) * D] = 1.0        # broadcast wgt over head-h lane group
            c[g, h, HD + h * H + g] = 1.0           # attn-weight slab position h*H + g
    return jnp.asarray(seg), jnp.asarray(c)


def spline_attention(x, w_aug, seg, c, *, num_heads, hidden_size, tile_m=1024):
    B, N, input_size = x.shape
    H, D = num_heads, hidden_size
    HD = H * D
    attn_pad = c.shape[-1] - HD
    assert w_aug.shape == (input_size + 1, (1 + 2 * H) * HD)

    # Flatten batch/points; tile rows. Keep >= 2 tiles when possible so both
    # v7x TensorCores get work; tile is a multiple of 8 sublanes.
    M = B * N
    tm_cap = max(8, ((pl.cdiv(M, 2) + 7) // 8) * 8)
    TILE_M = max(8, min(((tile_m + 7) // 8) * 8, tm_cap))
    n_tiles = pl.cdiv(M, TILE_M)
    M_pad = n_tiles * TILE_M

    x2 = x.reshape(M, input_size)
    x2 = jnp.concatenate([x2, jnp.ones((M, 1), x2.dtype)], axis=1)   # bias via ones column
    if M_pad != M:
        x2 = jnp.pad(x2, ((0, M_pad - M), (0, 0)))   # zero rows -> finite garbage, discarded below

    kernel = functools.partial(spline_attention_kernel,
                               num_heads=H, hidden_size=D)

    out, attn = pl.pallas_call(
        kernel,
        out_shape=(
            jax.ShapeDtypeStruct((M_pad, HD), x.dtype),
            jax.ShapeDtypeStruct((M_pad, attn_pad), jnp.float32),     # lane-dense attn slab
        ),
        grid_spec=pltpu.PrefetchScalarGridSpec(
            num_scalar_prefetch=0,
            grid=(n_tiles,),
            in_specs=[
                pl.BlockSpec((TILE_M, input_size + 1), lambda i: (i, 0)),   # x row tile
                pl.BlockSpec(w_aug.shape, lambda i: (0, 0)),                # packed weights (resident)
                pl.BlockSpec(seg.shape, lambda i: (0, 0)),                  # segment-sum matrix
                pl.BlockSpec(c.shape, lambda i: (0, 0, 0)),                 # expansion matrices
            ],
            out_specs=(
                pl.BlockSpec((TILE_M, HD), lambda i: (i, 0)),
                pl.BlockSpec((TILE_M, attn_pad), lambda i: (i, 0)),
            ),
        ),
        compiler_params=pltpu.CompilerParams(
            dimension_semantics=("parallel",),
            vmem_limit_bytes=32 * 1024 * 1024),
    )(x2, w_aug, seg, c)

    attended = out[:M].reshape(B, N, HD)
    attn_w = attn[:M, :H * H].reshape(B, N, H, H)
    return attended, attn_w


def spline_attention_reference(x, wq_t, bq, wk_t, bk, wv_t, bv, *, num_heads, hidden_size):
    B, N, _ = x.shape
    q = (x @ wq_t + bq).reshape(B, N, num_heads, hidden_size)
    k = (x @ wk_t + bk).reshape(B, N, num_heads, hidden_size)
    v = (x @ wv_t + bv).reshape(B, N, num_heads, hidden_size)
    scores = jnp.einsum('bnhd,bngd->bnhg', q, k) / math.sqrt(hidden_size)
    w = jax.nn.softmax(scores, axis=-1)
    att = jnp.einsum('bnhg,bngd->bnhd', w, v).reshape(B, N, -1)
    return att, w


if __name__ == "__main__":
    # Small shapes consistent with the module's forward signature.
    B, N = 2, 8                 # batch, num_points
    input_size = 16
    hidden_size = 32
    num_heads = 4
    HD = hidden_size * num_heads

    key = jax.random.PRNGKey(0)
    kx, kwq, kwk, kwv, kbq, kbk, kbv = jax.random.split(key, 7)

    x = jax.random.normal(kx, (B, N, input_size), dtype=jnp.float32)

    # Deterministic parameter init (mimicking nn.Linear's uniform fan-in scaling).
    bound = 1.0 / math.sqrt(input_size)
    def uinit(k, shape):
        return jax.random.uniform(k, shape, jnp.float32, -bound, bound)

    # PyTorch weight shape is (HD, input_size); pass transposed (input_size, HD).
    wq_t = uinit(kwq, (HD, input_size)).T
    wk_t = uinit(kwk, (HD, input_size)).T
    wv_t = uinit(kwv, (HD, input_size)).T
    bq = uinit(kbq, (HD,)).reshape(1, HD)
    bk = uinit(kbk, (HD,)).reshape(1, HD)
    bv = uinit(kbv, (HD,)).reshape(1, HD)

    # One-time packing (scale + bias + per-group K/V replication folded into the weight).
    w_aug = pack_params(wq_t, bq, wk_t, bk, wv_t, bv,
                        num_heads=num_heads, hidden_size=hidden_size)
    seg, c = make_constants(num_heads, hidden_size)

    attended, attn_w = spline_attention(
        x, w_aug, seg, c, num_heads=num_heads, hidden_size=hidden_size)
    jax.block_until_ready((attended, attn_w))

    ref_att, ref_w = spline_attention_reference(
        x, wq_t, bq, wk_t, bk, wv_t, bv,
        num_heads=num_heads, hidden_size=hidden_size)

    assert attended.shape == (B, N, HD)
    assert attn_w.shape == (B, N, num_heads, num_heads)
    # Tolerance covers default (reduced-precision) MXU f32 matmul on both paths;
    # the softmax normalization itself is exact (no approx reciprocal).
    assert jnp.allclose(attended, ref_att, atol=2e-3, rtol=2e-3)
    assert jnp.allclose(attn_w, ref_w, atol=2e-3, rtol=2e-3)

    print("KERNEL_OK")
</pallas_src>

<mosaic_0001>
module attributes {stable_mosaic.version = 11 : i64} {
  func.func @spline_attention_kernel(%arg0: i32, %arg1: memref<8x17xf32, #tpu.memory_space<vmem>>, %arg2: memref<17x1152xf32, #tpu.memory_space<vmem>>, %arg3: memref<128x8xf32, #tpu.memory_space<vmem>>, %arg4: memref<4x8x256xf32, #tpu.memory_space<vmem>>, %arg5: memref<8x128xf32, #tpu.memory_space<vmem>>, %arg6: memref<8x128xf32, #tpu.memory_space<vmem>>) attributes {dimension_semantics = [#tpu.dimension_semantics<parallel>], iteration_bounds = array<i64: 2>, scalar_prefetch = 0 : i64, scratch_operands = 0 : i64, tpu.core_type = #tpu.core_type<tc>, window_params = [{transform_indices = @transform_0, window_bounds = array<i64: 8, 17>}, {pipeline_mode = #tpu.pipeline_mode<synchronous>, transform_indices = @transform_1, window_bounds = array<i64: 17, 1152>}, {pipeline_mode = #tpu.pipeline_mode<synchronous>, transform_indices = @transform_2, window_bounds = array<i64: 128, 8>}, {pipeline_mode = #tpu.pipeline_mode<synchronous>, transform_indices = @transform_3, window_bounds = array<i64: 4, 8, 256>}, {transform_indices = @transform_4, window_bounds = array<i64: 8, 128>}, {transform_indices = @transform_5, window_bounds = array<i64: 8, 128>}]} {
    %c0 = arith.constant 0 : index
    %c0_0 = arith.constant 0 : index
    %0 = vector.load %arg1[%c0, %c0_0] : memref<8x17xf32, #tpu.memory_space<vmem>>, vector<8x17xf32>
    %c0_1 = arith.constant 0 : index
    %c0_2 = arith.constant 0 : index
    %1 = vector.load %arg2[%c0_1, %c0_2] : memref<17x1152xf32, #tpu.memory_space<vmem>>, vector<17x1152xf32>
    %cst = arith.constant dense<0.000000e+00> : vector<8x1152xf32>
    %2 = tpu.matmul %0, %1, %cst {dimension_numbers = #tpu.dot_dimension_numbers<[1], [0], [0], [1], [0, 0, 1, 1], [], []>} : vector<8x17xf32>, vector<17x1152xf32>, vector<8x1152xf32> -> vector<8x1152xf32>
    %3 = vector.extract_strided_slice %2 {offsets = [0, 0], sizes = [8, 128], strides = [1, 1]} : vector<8x1152xf32> to vector<8x128xf32>
    %c0_3 = arith.constant 0 : index
    %c0_4 = arith.constant 0 : index
    %4 = vector.load %arg3[%c0_3, %c0_4] : memref<128x8xf32, #tpu.memory_space<vmem>>, vector<128x8xf32>
    %5 = vector.extract_strided_slice %2 {offsets = [0, 128], sizes = [8, 128], strides = [1, 1]} : vector<8x1152xf32> to vector<8x128xf32>
    %6 = arith.mulf %3, %5 : vector<8x128xf32>
    %cst_5 = arith.constant dense<0.000000e+00> : vector<8x8xf32>
    %7 = tpu.matmul %6, %4, %cst_5 {dimension_numbers = #tpu.dot_dimension_numbers<[1], [0], [0], [1], [0, 0, 1, 1], [], []>} : vector<8x128xf32>, vector<128x8xf32>, vector<8x8xf32> -> vector<8x8xf32>
    %8 = vector.extract_strided_slice %2 {offsets = [0, 256], sizes = [8, 128], strides = [1, 1]} : vector<8x1152xf32> to vector<8x128xf32>
    %9 = arith.mulf %3, %8 : vector<8x128xf32>
    %cst_6 = arith.constant dense<0.000000e+00> : vector<8x8xf32>
    %10 = tpu.matmul %9, %4, %cst_6 {dimension_numbers = #tpu.dot_dimension_numbers<[1], [0], [0], [1], [0, 0, 1, 1], [], []>} : vector<8x128xf32>, vector<128x8xf32>, vector<8x8xf32> -> vector<8x8xf32>
    %11 = vector.extract_strided_slice %2 {offsets = [0, 384], sizes = [8, 128], strides = [1, 1]} : vector<8x1152xf32> to vector<8x128xf32>
    %12 = arith.mulf %3, %11 : vector<8x128xf32>
    %cst_7 = arith.constant dense<0.000000e+00> : vector<8x8xf32>
    %13 = tpu.matmul %12, %4, %cst_7 {dimension_numbers = #tpu.dot_dimension_numbers<[1], [0], [0], [1], [0, 0, 1, 1], [], []>} : vector<8x128xf32>, vector<128x8xf32>, vector<8x8xf32> -> vector<8x8xf32>
    %14 = vector.extract_strided_slice %2 {offsets = [0, 512], sizes = [8, 128], strides = [1, 1]} : vector<8x1152xf32> to vector<8x128xf32>
    %15 = arith.mulf %3, %14 : vector<8x128xf32>
    %cst_8 = arith.constant dense<0.000000e+00> : vector<8x8xf32>
    %16 = tpu.matmul %15, %4, %cst_8 {dimension_numbers = #tpu.dot_dimension_numbers<[1], [0], [0], [1], [0, 0, 1, 1], [], []>} : vector<8x128xf32>, vector<128x8xf32>, vector<8x8xf32> -> vector<8x8xf32>
    %17 = arith.maximumf %7, %10 : vector<8x8xf32>
    %18 = arith.maximumf %17, %13 : vector<8x8xf32>
    %19 = arith.maximumf %18, %16 : vector<8x8xf32>
    %20 = arith.subf %7, %19 : vector<8x8xf32>
    %21 = math.exp %20 : vector<8x8xf32>
    %22 = arith.subf %10, %19 : vector<8x8xf32>
    %23 = math.exp %22 : vector<8x8xf32>
    %24 = arith.subf %13, %19 : vector<8x8xf32>
    %25 = math.exp %24 : vector<8x8xf32>
    %26 = arith.subf %16, %19 : vector<8x8xf32>
    %27 = math.exp %26 : vector<8x8xf32>
    %28 = arith.addf %21, %23 : vector<8x8xf32>
    %29 = arith.addf %28, %25 : vector<8x8xf32>
    %30 = arith.addf %29, %27 : vector<8x8xf32>
    %cst_9 = arith.constant 1.000000e+00 : f32
    %31 = vector.broadcast %cst_9 : f32 to vector<8x8xf32>
    %32 = arith.divf %31, %30 : vector<8x8xf32>
    %33 = arith.mulf %21, %32 : vector<8x8xf32>
    %34 = arith.mulf %23, %32 : vector<8x8xf32>
    %35 = arith.mulf %25, %32 : vector<8x8xf32>
    %36 = arith.mulf %27, %32 : vector<8x8xf32>
    %c0_10 = arith.constant 0 : index
    %c0_11 = arith.constant 0 : index
    %c0_12 = arith.constant 0 : index
    %37 = vector.load %arg4[%c0_10, %c0_11, %c0_12] : memref<4x8x256xf32, #tpu.memory_space<vmem>>, vector<1x8x256xf32>
    %38 = vector.shape_cast %37 : vector<1x8x256xf32> to vector<8x256xf32>
    %cst_13 = arith.constant dense<0.000000e+00> : vector<8x256xf32>
    %39 = tpu.matmul %33, %38, %cst_13 {dimension_numbers = #tpu.dot_dimension_numbers<[1], [0], [0], [1], [0, 0, 1, 1], [], []>} : vector<8x8xf32>, vector<8x256xf32>, vector<8x256xf32> -> vector<8x256xf32>
    %40 = vector.extract_strided_slice %2 {offsets = [0, 640], sizes = [8, 128], strides = [1, 1]} : vector<8x1152xf32> to vector<8x128xf32>
    %41 = vector.extract_strided_slice %39 {offsets = [0, 0], sizes = [8, 128], strides = [1, 1]} : vector<8x256xf32> to vector<8x128xf32>
    %42 = arith.mulf %41, %40 : vector<8x128xf32>
    %43 = vector.extract_strided_slice %39 {offsets = [0, 128], sizes = [8, 128], strides = [1, 1]} : vector<8x256xf32> to vector<8x128xf32>
    %c1 = arith.constant 1 : index
    %c0_14 = arith.constant 0 : index
    %c0_15 = arith.constant 0 : index
    %44 = vector.load %arg4[%c1, %c0_14, %c0_15] : memref<4x8x256xf32, #tpu.memory_space<vmem>>, vector<1x8x256xf32>
    %45 = vector.shape_cast %44 : vector<1x8x256xf32> to vector<8x256xf32>
    %cst_16 = arith.constant dense<0.000000e+00> : vector<8x256xf32>
    %46 = tpu.matmul %34, %45, %cst_16 {dimension_numbers = #tpu.dot_dimension_numbers<[1], [0], [0], [1], [0, 0, 1, 1], [], []>} : vector<8x8xf32>, vector<8x256xf32>, vector<8x256xf32> -> vector<8x256xf32>
    %47 = vector.extract_strided_slice %2 {offsets = [0, 768], sizes = [8, 128], strides = [1, 1]} : vector<8x1152xf32> to vector<8x128xf32>
    %48 = vector.extract_strided_slice %46 {offsets = [0, 0], sizes = [8, 128], strides = [1, 1]} : vector<8x256xf32> to vector<8x128xf32>
    %49 = arith.mulf %48, %47 : vector<8x128xf32>
    %50 = arith.addf %42, %49 : vector<8x128xf32>
    %51 = vector.extract_strided_slice %46 {offsets = [0, 128], sizes = [8, 128], strides = [1, 1]} : vector<8x256xf32> to vector<8x128xf32>
    %52 = arith.addf %43, %51 : vector<8x128xf32>
    %c2 = arith.constant 2 : index
    %c0_17 = arith.constant 0 : index
    %c0_18 = arith.constant 0 : index
    %53 = vector.load %arg4[%c2, %c0_17, %c0_18] : memref<4x8x256xf32, #tpu.memory_space<vmem>>, vector<1x8x256xf32>
    %54 = vector.shape_cast %53 : vector<1x8x256xf32> to vector<8x256xf32>
    %cst_19 = arith.constant dense<0.000000e+00> : vector<8x256xf32>
    %55 = tpu.matmul %35, %54, %cst_19 {dimension_numbers = #tpu.dot_dimension_numbers<[1], [0], [0], [1], [0, 0, 1, 1], [], []>} : vector<8x8xf32>, vector<8x256xf32>, vector<8x256xf32> -> vector<8x256xf32>
    %56 = vector.extract_strided_slice %2 {offsets = [0, 896], sizes = [8, 128], strides = [1, 1]} : vector<8x1152xf32> to vector<8x128xf32>
    %57 = vector.extract_strided_slice %55 {offsets = [0, 0], sizes = [8, 128], strides = [1, 1]} : vector<8x256xf32> to vector<8x128xf32>
    %58 = arith.mulf %57, %56 : vector<8x128xf32>
    %59 = arith.addf %50, %58 : vector<8x128xf32>
    %60 = vector.extract_strided_slice %55 {offsets = [0, 128], sizes = [8, 128], strides = [1, 1]} : vector<8x256xf32> to vector<8x128xf32>
    %61 = arith.addf %52, %60 : vector<8x128xf32>
    %c3 = arith.constant 3 : index
    %c0_20 = arith.constant 0 : index
    %c0_21 = arith.constant 0 : index
    %62 = vector.load %arg4[%c3, %c0_20, %c0_21] : memref<4x8x256xf32, #tpu.memory_space<vmem>>, vector<1x8x256xf32>
    %63 = vector.shape_cast %62 : vector<1x8x256xf32> to vector<8x256xf32>
    %cst_22 = arith.constant dense<0.000000e+00> : vector<8x256xf32>
    %64 = tpu.matmul %36, %63, %cst_22 {dimension_numbers = #tpu.dot_dimension_numbers<[1], [0], [0], [1], [0, 0, 1, 1], [], []>} : vector<8x8xf32>, vector<8x256xf32>, vector<8x256xf32> -> vector<8x256xf32>
    %65 = vector.extract_strided_slice %2 {offsets = [0, 1024], sizes = [8, 128], strides = [1, 1]} : vector<8x1152xf32> to vector<8x128xf32>
    %66 = vector.extract_strided_slice %64 {offsets = [0, 0], sizes = [8, 128], strides = [1, 1]} : vector<8x256xf32> to vector<8x128xf32>
    %67 = arith.mulf %66, %65 : vector<8x128xf32>
    %68 = arith.addf %59, %67 : vector<8x128xf32>
    %69 = vector.extract_strided_slice %64 {offsets = [0, 128], sizes = [8, 128], strides = [1, 1]} : vector<8x256xf32> to vector<8x128xf32>
    %70 = arith.addf %61, %69 : vector<8x128xf32>
    %c0_23 = arith.constant 0 : index
    %c0_24 = arith.constant 0 : index
    %71 = vector.load %arg5[%c0_23, %c0_24] : memref<8x128xf32, #tpu.memory_space<vmem>>, vector<8x128xf32>
    tpu.vector_store %arg5[%c0_23, %c0_24], %68 {strides = array<i32>} : memref<8x128xf32, #tpu.memory_space<vmem>>, vector<8x128xf32>,
    %c0_25 = arith.constant 0 : index
    %c0_26 = arith.constant 0 : index
    %72 = vector.load %arg6[%c0_25, %c0_26] : memref<8x128xf32, #tpu.memory_space<vmem>>, vector<8x128xf32>
    tpu.vector_store %arg6[%c0_25, %c0_26], %70 {strides = array<i32>} : memref<8x128xf32, #tpu.memory_space<vmem>>, vector<8x128xf32>,
    return
  }
  func.func @transform_0(%arg0: i32) -> (i32, i32) {
    %c0_i32 = arith.constant 0 : i32
    %c0_i32_0 = arith.constant 0 : i32
    return %arg0, %c0_i32 : i32, i32
  }
  func.func @transform_1(%arg0: i32) -> (i32, i32) {
    %c0_i32 = arith.constant 0 : i32
    %c0_i32_0 = arith.constant 0 : i32
    %c0_i32_1 = arith.constant 0 : i32
    return %c0_i32, %c0_i32_0 : i32, i32
  }
  func.func @transform_2(%arg0: i32) -> (i32, i32) {
    %c0_i32 = arith.constant 0 : i32
    %c0_i32_0 = arith.constant 0 : i32
    %c0_i32_1 = arith.constant 0 : i32
    return %c0_i32, %c0_i32_0 : i32, i32
  }
  func.func @transform_3(%arg0: i32) -> (i32, i32, i32) {
    %c0_i32 = arith.constant 0 : i32
    %c0_i32_0 = arith.constant 0 : i32
    %c0_i32_1 = arith.constant 0 : i32
    %c0_i32_2 = arith.constant 0 : i32
    return %c0_i32, %c0_i32_0, %c0_i32_1 : i32, i32, i32
  }
  func.func @transform_4(%arg0: i32) -> (i32, i32) {
    %c0_i32 = arith.constant 0 : i32
    %c0_i32_0 = arith.constant 0 : i32
    return %arg0, %c0_i32 : i32, i32
  }
  func.func @transform_5(%arg0: i32) -> (i32, i32) {
    %c0_i32 = arith.constant 0 : i32
    %c0_i32_0 = arith.constant 0 : i32
    return %arg0, %c0_i32 : i32, i32
  }
}

</mosaic_0001>

<bundles_post_ra>
// kernel: tpu_custom_call.1
= control target key start
LH: loop header
LB: loop body
LE: loop exit
PB: predicated region body
PF: predicated region fallthrough
CT: control target
= control target key end

     0   :  { %11 = vsyncpa [#allocation3], 0  ;;  %s1470_s0 = inlined_call_operand.vmem [shape: f32[16,17], index: 0, kind: input, shape index: {}]   ;;  %s1471_s1 = inlined_call_operand.hbm [shape: f32[17,1152], index: 1, kind: input, shape index: {}]   ;;  %s1472_s2 = inlined_call_operand.vmem [shape: f32[128,8], index: 2, kind: input, shape index: {}]   ;;  %s1473_s3 = inlined_call_operand.vmem [shape: f32[4,8,256], index: 3, kind: input, shape index: {}]   ;;  %s1474_s4 = inlined_call_operand.hbm [shape: f32[16,128], index: 4, kind: output, shape index: {0}]   ;;  %s1475_s5 = inlined_call_operand.hbm [shape: f32[16,128], index: 5, kind: output, shape index: {1}]  }
   0x1   :  { %12 = vsyncpa [#allocation4], 0 }
   0x2   :  { %14 = vsyncpa [#allocation4 + $0x1], 0 }
   0x3   :  { %15 = vsyncpa [#allocation7], 0 }
   0x4   :  { %17 = vsyncpa [#allocation7 + $0x1], 0  ;;  %s1237_s18 = smov 0   ;;  %s1239_s19 = smov 0  }
   0x5   :  { %s1241_s20 = smov 0   ;;  %s1243_s21 = smov 0  }
   0x6 LB: > { %s1258_s22 = sadd.s32 4294967295, %s1202_s21   ;;  %s960_s23 = sadd.s32 4294967294, %s1202_s21   ;;  %s1202_s21 = sphi %s1243_s21, %s1481_s21   ;;  %s1198_s20 = sphi %s1241_s20, %s1480_s20   ;;  %s1194_s19 = sphi %s1239_s19, %s1479_s19   ;;  %s1190_s18 = sphi %s1237_s18, %s1478_s18  }
   0x7   : > { %s1262_s24 = sadd.s32 1, %s1202_s21   ;;  %s119_s25 = sadd.s32 1, %s1198_s20 }
   0x8   : > { %s116_s26 = ssub.s32 %s1202_s21, %s1262_s24  ;;  %p129_p0 = scmp.ne.s32.totalorder %s1198_s20, %s1194_s19 }
   0x9   : > { %p117_p1 = scmp.eq.s32.totalorder %s116_s26, 0  ;;  %p130_p2 = scmp.eq.s32.totalorder %s1258_s22, 1 }
   0xa   : > { %p135_p3 = scmp.ne.s32.totalorder %s1194_s19, %s1190_s18  ;;  %p136_p4 = scmp.eq.s32.totalorder %s960_s23, 1 }
   0xb   : > { %s1273_s27 = scalar_select %p117_p1, %s1198_s20, %s119_s25  }
   0xc   : > { %p1275_p5 = por %p130_p2, %p129_p0  ;;  %p1279_p6 = por %p136_p4, %p135_p3 }
   0xd   : > { %p961_p7 = scmp.ge.s32.totalorder %s1202_s21, 1  ;;  %p169_p8 = scmp.lt.s32.totalorder %s1202_s21, 3 }
   0xe   : > { %p1026_p9 = scmp.eq.s32.totalorder %s1258_s22, 0  ;;  %s180_s7 = sshll.u32 %s1471_s1, 4  ;;  %s181_s7 = int_to_ptr.hbm [resolvable:$true] %s180_s7 }
   0xf   : > { %p170_p10 = pnand %p961_p7, %p169_p8  ;;  %s1204_s8 = smov [#allocation2]  }
  0x10   : > { %s182_s9 = sshll.u32 %s1204_s8, 4  ;;  %s1205_s10 = smov 1152   ;;  %s183_s9 = int_to_ptr.vmem [resolvable:$true] %s182_s9 }
  0x11   : > { %p1015_p11 = pneg %p170_p10  ;;  %s1206_s11 = smov 72  }
  0x12   : > { %211 = sbr.rel (%p170_p10) target bundleno = 500 (0x1f4), region = 36 }
  0x13   : > { %p1016_p12 = pnand %p1026_p9, %p1015_p11 }
  0x15   : > { %1018 = dma.hbm_to_vmem [thread:$0]  (!%p1016_p12), %s181_s7, 3456, %s183_s9, [#allocation3], %s1205_s10, %s1205_s10, %s1206_s11  }
  0x17   : > { %1177 = dma.done.wait (%p1026_p9), [#allocation3], 3456  }
  0x18   : > { %1179 = vsyncadd (%p1026_p9), [#allocation3], 4294963840  ;;  %p244_p13 = scmp.lt.s32.totalorder %s1258_s22, 1  ;;  %vm280_vm0 = vcmask 1040384   ;;  %v267_v0 = vld [vmem:[#allocation2 + $0x90] sm:$0x1] }
  0x19   : > { %v269_v1 = vld [vmem:[#allocation2 + $0xa0] sm:$0x1]  ;;  %v270_v2 = vld [vmem:[#allocation2 + $0xa8] sm:$0x1]  ;;  %969 = vmatpush.msk.msra.mxu0 %vm280_vm0, %v267_v0  ;;  %v260_v4 = vld [vmem:[#allocation2 + $0x58] sm:$0xff]  ;;  %vm276_vm1 = vcmask 138240  }
  0x1a   : > { %s245_s12 = scalar_select %p244_p13, %s1258_s22, 1  ;;  %973 = vmatpush.msk.msra.mxu2 %vm280_vm0, %v269_v1  ;;  %v258_v3 = vld [vmem:[#allocation2 + $0x48] sm:$0xff]  ;;  %v261_v5 = vld [vmem:[#allocation2 + $0x60] sm:$0xff]  ;;  %975 = vmatpush.msk.msra.mxu3 %vm280_vm0, %v270_v2  ;;  %v251_v7 = vld [vmem:[#allocation2 + $0x10] sm:$0xff]  ;;  %vm627_vm6 = vcmask 64512  }
  0x1b   : > { %v249_v6 = vld [vmem:[#allocation2] sm:$0xff]  ;;  %322 = vmatpush.msra.mxu0 %v258_v3  ;;  %v252_v8 = vld [vmem:[#allocation2 + $0x18] sm:$0xff]  ;;  %v259_v11 = vld [vmem:[#allocation2 + $0x50] sm:$0xff]  ;;  %s1410_s17 = sand.u32 1, %s1194_s19   ;;  %s1003_s25 = sshll.u32 %s1258_s22, 3 }
  0x1c   : > { %s968_s13 = sshll.u32 %s245_s12, 3  ;;  %362 = vmatpush.msra.mxu2 %v260_v4  ;;  %v268_v10 = vld [vmem:[#allocation2 + $0x98] sm:$0x1]  ;;  %382 = vmatpush.msra.mxu3 %v261_v5  ;;  %v271_v12 = vld [vmem:[#allocation2 + $0xb0] sm:$0x1]  ;;  %v250_v15 = vld [vmem:[#allocation2 + $0x8] sm:$0xff]  ;;  %s851_s6 = scalar_lea.hbm %s1475_s5, %s1003_s25 }
  0x1d   : > { %s247_s16 = scalar_lea.vmem %s1470_s0, %s968_s13  ;;  %971 = vmatpush.msk.msra.mxu1 %vm280_vm0, %v268_v10  ;;  %323 = vmatpush.msra.mxu0 %v249_v6  ;;  %v273_v13 = vld [vmem:[#allocation2 + $0xc0] sm:$0x1]  ;;  %v274_v14 = vld [vmem:[#allocation2 + $0xc8] sm:$0x1]  ;;  %v264_v17 = vld [vmem:[#allocation2 + $0x78] sm:$0xff]  ;;  %s966_s23 = sshll.u32 %s1410_s17, 3 }
  0x1e   : > { %v1303_v9 = vld [vmem:[%s247_s16] sm:$0xff]  ;;  %363 = vmatpush.msra.mxu2 %v251_v7  ;;  %383 = vmatpush.msra.mxu3 %v252_v8  ;;  %v262_v16 = vld [vmem:[#allocation2 + $0x68] sm:$0xff]  ;;  %v272_v19 = vld [vmem:[#allocation2 + $0xb8] sm:$0x1]  ;;  %s837_s9 = scalar_lea.hbm %s1474_s4, %s1003_s25  ;;  %s243_s10 = scalar_lea.vmem [#allocation6], %s966_s23 }
  0x1f   : > { %970 = vmatmul.msk.f32.vlgmr.msra.gmra.mxu0 %vm276_vm1, %v1303_v9  ;;  %974 = vmatmul.msk.f32.vlgmr.msra.gmra.mxu2 %vm276_vm1, %v1303_v9  ;;  %v253_v18 = vld [vmem:[#allocation2 + $0x20] sm:$0xff]  ;;  %v275_v21 = vld [vmem:[#allocation2 + $0xd0] sm:$0x1]  ;;  %v256_v24 = vld [vmem:[#allocation2 + $0x38] sm:$0xff]  ;;  %s853_s11 = sshll.u32 %s243_s10, 4  ;;  %s855_s12 = sshll.u32 %s851_s6, 4  ;;  %s854_s11 = int_to_ptr.vmem [resolvable:$true] %s853_s11  ;;  %s856_s12 = int_to_ptr.hbm [resolvable:$true] %s855_s12 }
  0x20   : > { %976 = vmatmul.msk.f32.vlgmr.msra.gmra.mxu3 %vm276_vm1, %v1303_v9  ;;  %342 = vmatpush.msra.mxu1 %v259_v11  ;;  %v265_v20 = vld [vmem:[#allocation2 + $0x80] sm:$0xff]  ;;  %v263_v22 = vld [vmem:[#allocation2 + $0x70] sm:$0xff]  ;;  %v254_v25 = vld [vmem:[#allocation2 + $0x28] sm:$0xff]  ;;  %s236_s22 = scalar_lea.vmem [#allocation5], %s966_s23  ;;  %s841_s14 = sshll.u32 %s837_s9, 4  ;;  %s1426_s14 = int_to_ptr.hbm [resolvable:$true] %s841_s14 }
  0x21   : > { %977 = vmatpush.msk.msrb.mxu0 %vm280_vm0, %v271_v12  ;;  %981 = vmatpush.msk.msrb.mxu2 %vm280_vm0, %v273_v13  ;;  %v255_v23 = vld [vmem:[#allocation2 + $0x30] sm:$0xff]  ;;  %v266_v26 = vld [vmem:[#allocation2 + $0x88] sm:$0xff]  ;;  %v503_v27 = vld [vmem:[%s1472_s2 + $0x78] sm:$0xff]  ;;  %s839_s13 = sshll.u32 %s236_s22, 4  ;;  %s827_s15 = scalar_lea.sflag [#allocation7], %s1410_s17  ;;  %s1424_s13 = int_to_ptr.vmem [resolvable:$true] %s839_s13 }
  0x22   : > { %983 = vmatpush.msk.msrb.mxu3 %vm280_vm0, %v274_v14  ;;  %343 = vmatpush.msra.mxu1 %v250_v15  ;;  %v257_v28 = vld [vmem:[#allocation2 + $0x40] sm:$0xff]  ;;  %v502_v29 = vld [vmem:[%s1472_s2 + $0x70] sm:$0xff]  ;;  %v501_v30 = vld [vmem:[%s1472_s2 + $0x68] sm:$0xff]  ;;  %s1118_s16 = sshra.s32 %s856_s12, 4  ;;  %s1124_s30 = scalar_lea.hbm %s1475_s5, 16  ;;  %s1119_s16 = int_to_ptr.hbm [resolvable:$true] %s1118_s16 }
  0x23   : > { %402 = vmatpush.msrb.mxu0 %v262_v16  ;;  %972 = vmatmul.msk.f32.vlgmr.msra.gmra.mxu1 %vm276_vm1, %v1303_v9  ;;  %v500_v31 = vld [vmem:[%s1472_s2 + $0x60] sm:$0xff]  ;;  %v499_v32 = vld [vmem:[%s1472_s2 + $0x58] sm:$0xff]  ;;  %v498_v33 = vld [vmem:[%s1472_s2 + $0x50] sm:$0xff]  ;;  %s1120_s23 = scalar_lea.hbm %s1119_s16, 8  ;;  %p1125_p3 = scmp.lt.s32.totalorder %s1119_s16, %s1475_s5 }
  0x24   : > { %442 = vmatpush.msrb.mxu2 %v264_v17  ;;  %979 = vmatpush.msk.msrb.mxu1 %vm280_vm0, %v272_v19  ;;  %v497_v34 = vld [vmem:[%s1472_s2 + $0x48] sm:$0xff]  ;;  %v496_v35 = vld [vmem:[%s1472_s2 + $0x40] sm:$0xff]  ;;  %v495_v36 = vld [vmem:[%s1472_s2 + $0x38] sm:$0xff]  ;;  %p1121_p0 = scmp.ne.s32.totalorder %s1119_s16, %s1120_s23  ;;  %p1126_p4 = scmp.lt.s32.totalorder %s1124_s30, %s1120_s23 }
  0x25   : > { %403 = vmatpush.msrb.mxu0 %v253_v18  ;;  %462 = vmatpush.msrb.mxu3 %v265_v20  ;;  %v494_v37 = vld [vmem:[%s1472_s2 + $0x30] sm:$0xff]  ;;  %v493_v38 = vld [vmem:[%s1472_s2 + $0x28] sm:$0xff]  ;;  %v492_v39 = vld [vmem:[%s1472_s2 + $0x20] sm:$0xff] }
  0x26   : > { %422 = vmatpush.msrb.mxu1 %v263_v22  ;;  %443 = vmatpush.msrb.mxu2 %v255_v23  ;;  %v491_v40 = vld [vmem:[%s1472_s2 + $0x18] sm:$0xff]  ;;  %v490_v41 = vld [vmem:[%s1472_s2 + $0x10] sm:$0xff]  ;;  %v489_v42 = vld [vmem:[%s1472_s2 + $0x8] sm:$0xff]  ;;  %p1122_p1 = pnand %p1121_p0, %p1275_p5  ;;  %p1127_p7 = por %p1126_p4, %p1125_p3 }
  0x27   : > { %985 = vmatpush.msk.msra.mxu0 %vm280_vm0, %v275_v21  ;;  %463 = vmatpush.msrb.mxu3 %v256_v24  ;;  %v488_v43 = vld [vmem:[%s1472_s2] sm:$0xff]  ;;  %v626_v7 = vld [vmem:[%s1473_s3 + $0x8] sm:$0xff]  ;;  %v989_v8 = vld [vmem:[%s1473_s3 + $0x10] sm:$0xff] }
  0x28   : > { %978 = vmatmul.msk.f32.vlgmr.msrb.gmra.mxu0 %vm276_vm1, %v1303_v9  ;;  %423 = vmatpush.msrb.mxu1 %v254_v25  ;;  %v990_v10 = vld [vmem:[%s1473_s3 + $0x18] sm:$0xff]  ;;  %v994_v12 = vld [vmem:[%s1473_s3 + $0x28] sm:$0xff]  ;;  %v997_v13 = vld [vmem:[%s1473_s3 + $0x30] sm:$0xff]  ;;  %p1123_p2 = pneg %p1122_p1 }
  0x29   : > { %482 = vmatpush.msra.mxu0 %v266_v26  ;;  %526 = vmatpush.msra.mxu2 %v503_v27  ;;  %v993_v14 = vld [vmem:[%s1473_s3 + $0x20] sm:$0xff]  ;;  %v998_v15 = vld [vmem:[%s1473_s3 + $0x38] sm:$0xff] }
  0x2a   : > { %505 = vmatpush.msra.mxu1 %v503_v27  ;;  %547 = vmatpush.msra.mxu3 %v503_v27  ;;  %p1128_p8 = pnand %p1127_p7, %p1123_p2 }
  0x2b   : > { %483 = vmatpush.msra.mxu0 %v257_v28  ;;  %527 = vmatpush.msra.mxu2 %v502_v29 }
  0x2c   : > { %506 = vmatpush.msra.mxu1 %v502_v29  ;;  %548 = vmatpush.msra.mxu3 %v502_v29 }
  0x2d   : > { %568 = vmatpush.msrb.mxu0 %v503_v27  ;;  %528 = vmatpush.msra.mxu2 %v501_v30 }
  0x2e   : > { %507 = vmatpush.msra.mxu1 %v501_v30  ;;  %549 = vmatpush.msra.mxu3 %v501_v30 }
  0x2f   : > { %569 = vmatpush.msrb.mxu0 %v502_v29  ;;  %529 = vmatpush.msra.mxu2 %v500_v31 }
  0x30   : > { %508 = vmatpush.msra.mxu1 %v500_v31  ;;  %550 = vmatpush.msra.mxu3 %v500_v31 }
  0x31   : > { %570 = vmatpush.msrb.mxu0 %v501_v30  ;;  %530 = vmatpush.msra.mxu2 %v499_v32 }
  0x32   : > { %509 = vmatpush.msra.mxu1 %v499_v32  ;;  %551 = vmatpush.msra.mxu3 %v499_v32 }
  0x33   : > { %571 = vmatpush.msrb.mxu0 %v500_v31  ;;  %531 = vmatpush.msra.mxu2 %v498_v33 }
  0x34   : > { %510 = vmatpush.msra.mxu1 %v498_v33  ;;  %552 = vmatpush.msra.mxu3 %v498_v33 }
  0x35   : > { %572 = vmatpush.msrb.mxu0 %v499_v32  ;;  %532 = vmatpush.msra.mxu2 %v497_v34 }
  0x36   : > { %511 = vmatpush.msra.mxu1 %v497_v34  ;;  %553 = vmatpush.msra.mxu3 %v497_v34 }
  0x37   : > { %573 = vmatpush.msrb.mxu0 %v498_v33  ;;  %533 = vmatpush.msra.mxu2 %v496_v35 }
  0x38   : > { %512 = vmatpush.msra.mxu1 %v496_v35  ;;  %554 = vmatpush.msra.mxu3 %v496_v35 }
  0x39   : > { %574 = vmatpush.msrb.mxu0 %v497_v34  ;;  %534 = vmatpush.msra.mxu2 %v495_v36 }
  0x3a   : > { %513 = vmatpush.msra.mxu1 %v495_v36  ;;  %555 = vmatpush.msra.mxu3 %v495_v36 }
  0x3b   : > { %575 = vmatpush.msrb.mxu0 %v496_v35  ;;  %535 = vmatpush.msra.mxu2 %v494_v37 }
  0x3c   : > { %514 = vmatpush.msra.mxu1 %v494_v37  ;;  %556 = vmatpush.msra.mxu3 %v494_v37 }
  0x3d   : > { %576 = vmatpush.msrb.mxu0 %v495_v36  ;;  %536 = vmatpush.msra.mxu2 %v493_v38 }
  0x3e   : > { %515 = vmatpush.msra.mxu1 %v493_v38  ;;  %557 = vmatpush.msra.mxu3 %v493_v38 }
  0x3f   : > { %577 = vmatpush.msrb.mxu0 %v494_v37  ;;  %980 = vmatmul.msk.f32.vlgmr.msrb.gmra.mxu1 %vm276_vm1, %v1303_v9 }
  0x40   : > { %982 = vmatmul.msk.f32.vlgmr.msrb.gmra.mxu2 %vm276_vm1, %v1303_v9  ;;  %984 = vmatmul.msk.f32.vlgmr.msrb.gmra.mxu3 %vm276_vm1, %v1303_v9 }
  0x41   : > { %578 = vmatpush.msrb.mxu0 %v493_v38  ;;  %516 = vmatpush.msra.mxu1 %v492_v39 }
  0x42   : > { %986 = vmatmul.msk.f32.vlgmr.msra.gmra.mxu0 %vm276_vm1, %v1303_v9  ;;  %537 = vmatpush.msra.mxu2 %v492_v39  ;;  %v625_v9 = vld [vmem:[%s1473_s3] sm:$0xff] }
  0x43   : > { %558 = vmatpush.msra.mxu3 %v492_v39  ;;  %579 = vmatpush.msrb.mxu0 %v492_v39 }
  0x44   : > { %517 = vmatpush.msra.mxu1 %v491_v40  ;;  %538 = vmatpush.msra.mxu2 %v491_v40 }
  0x45   : > { %559 = vmatpush.msra.mxu3 %v491_v40  ;;  %580 = vmatpush.msrb.mxu0 %v491_v40 }
  0x46   : > { %518 = vmatpush.msra.mxu1 %v490_v41  ;;  %539 = vmatpush.msra.mxu2 %v490_v41 }
  0x47   : > { %560 = vmatpush.msra.mxu3 %v490_v41  ;;  %581 = vmatpush.msrb.mxu0 %v490_v41 }
  0x48   : > { %519 = vmatpush.msra.mxu1 %v489_v42  ;;  %540 = vmatpush.msra.mxu2 %v489_v42 }
  0x49   : > { %561 = vmatpush.msra.mxu3 %v489_v42  ;;  %582 = vmatpush.msrb.mxu0 %v489_v42 }
  0x4a   : > { %520 = vmatpush.msra.mxu1 %v488_v43  ;;  %541 = vmatpush.msra.mxu2 %v488_v43 }
  0x4b   : > { %562 = vmatpush.msra.mxu3 %v488_v43  ;;  %583 = vmatpush.msrb.mxu0 %v488_v43 }
  0x4c   : > { %666 = vmatpush.msrb.mxu2 %v626_v7  ;;  %646 = vmatpush.msrb.mxu1 %v625_v9 }
  0x4d   : > { %693 = vmatpush.msrb.mxu3 %v989_v8  ;;  %713 = vmatpush.msra.mxu0 %v990_v10 }
  0x9c   : > { %v325_v44 = vpop.f32.mrf.mxu0 }
  0xa0   : > { %v345_v45 = vpop.f32.mrf.mxu1 }
  0xa1   : > { %v504_v46 = vmul.f32 %v345_v45, %v325_v44 }
  0xa2   : > { %v365_v47 = vpop.f32.mrf.mxu2 }
  0xa3   : > { %v385_v48 = vpop.f32.mrf.mxu3  ;;  %v525_v49 = vmul.f32 %v365_v47, %v325_v44  ;;  %521 = vmatmul.f32.vlgmr.msra.gmra.mxu1 %v504_v46 }
  0xa4   : > { %v546_v50 = vmul.f32 %v385_v48, %v325_v44  ;;  %742 = vmatpush.msra.mxu1 %v993_v14 }
  0xa5   : > { %v405_v51 = vpop.f32.mrf.mxu0  ;;  %542 = vmatmul.f32.vlgmr.msra.gmra.mxu2 %v525_v49 }
  0xa6   : > { %v567_v52 = vmul.f32 %v405_v51, %v325_v44  ;;  %563 = vmatmul.f32.vlgmr.msra.gmra.mxu3 %v546_v50  ;;  %762 = vmatpush.msra.mxu2 %v994_v12 }
  0xa7   : > { %791 = vmatpush.msra.mxu3 %v997_v13 }
  0xa8   : > { %584 = vmatmul.f32.vlgmr.msrb.gmra.mxu0 %v567_v52 }
  0xa9   : > { %811 = vmatpush.msrb.mxu0 %v998_v15 }
  0xbc   : > { %v1377_v53 = vpop.f32.mrf.mxu1 }
  0xbf   : > { %v1383_v56 = vpop.f32.mrf.mxu0 }
  0xc3   : > { %v1379_v54 = vpop.f32.mrf.mxu2  ;;  %v1381_v55 = vpop.f32.mrf.mxu3 }
 0x120   : > { %v522_v57 = vpop.f32.mrf.mxu1 }
 0x125   : > { %v585_v62 = vpop.f32.mrf.mxu0 }
 0x128   : > { %v543_v58 = vpop.f32.mrf.mxu2 }
 0x129   : > { %v588_v59 = vmax.f32 %v522_v57, %v543_v58  ;;  %v564_v60 = vpop.f32.mrf.mxu3 }
 0x12b   : > { %v589_v61 = vmax.f32 %v588_v59, %v564_v60 }
 0x12d   : > { %v590_v63 = vmax.f32 %v589_v61, %v585_v62 }
 0x12f   : > { %v591_v0 = vsub.f32 %v522_v57, %v590_v63  ;;  %v594_v1 = vsub.f32 %v543_v58, %v590_v63  ;;  %v597_v2 = vsub.f32 %v564_v60, %v590_v63  ;;  %v600_v3 = vsub.f32 %v585_v62, %v590_v63 }
 0x131   : > { %v592_v4 = vmul.f32 1.442695, %v591_v0  ;;  %v595_v5 = vmul.f32 1.442695, %v594_v1  ;;  %v598_v6 = vmul.f32 1.442695, %v597_v2 }
 0x132   : > { %v601_v11 = vmul.f32 1.442695, %v600_v3 }
 0x133   : > { %1064 = vpow2.f32 %v592_v4 }
 0x134   : > { %1066 = vpow2.f32 %v595_v5 }
 0x135   : > { %1068 = vpow2.f32 %v598_v6 }
 0x136   : > { %1070 = vpow2.f32 %v601_v11 }
 0x139   : > { %v1065_v16 = vpop.eup %1064 }
 0x13a   : > { %v1067_v17 = vpop.eup %1066 }
 0x13b   : > { %v603_v18 = vadd.f32 %v1067_v17, %v1065_v16  ;;  %v1069_v19 = vpop.eup %1068 }
 0x13c   : > { %v1071_v21 = vpop.eup %1070 }
 0x13d   : > { %v604_v20 = vadd.f32 %v1069_v19, %v603_v18 }
 0x13f   : > { %v605_v22 = vadd.f32 %v1071_v21, %v604_v20 }
 0x141   : > { %1072 = vrcp.f32 %v605_v22  ;;  %v617_v26 = vand.u32 2147483648, %v605_v22  ;;  %v615_v28 = vand.u32 2147483647, %v605_v22  ;;  %vm611_vm3 = vweird.f32 %v605_v22 }
 0x143   : > { %v618_v30 = vor.u32 1.1754944e-38, %v617_v26  ;;  %vm616_vm5 = vcmp.eq.f32.partialorder %v615_v28, 8.507059e+37 }
 0x147   : > { %v1073_v23 = vpop.eup %1072 }
 0x148   : > { %v607_v24 = vmul.f32 %v1073_v23, %v605_v22  ;;  %vm612_vm2 = vweird.f32 %v1073_v23 }
 0x149   : > { %vm613_vm4 = vmor %vm611_vm3, %vm612_vm2 }
 0x14a   : > { %v608_v25 = vsub.f32 1.0, %v607_v24 }
 0x14c   : > { %v609_v27 = vmul.f32 %v1073_v23, %v608_v25 }
 0x14e   : > { %v610_v29 = vadd.f32 %v1073_v23, %v609_v27 }
 0x150   : > { %v614_v31 = vsel %vm613_vm4, %v1073_v23, %v610_v29 }
 0x151   : > { %v619_v32 = vsel %vm616_vm5, %v618_v30, %v614_v31 }
 0x152   : > { %v621_v33 = vmul.f32 %v1065_v16, %v619_v32  ;;  %v622_v34 = vmul.f32 %v1067_v17, %v619_v32  ;;  %v623_v35 = vmul.f32 %v1069_v19, %v619_v32  ;;  %v624_v36 = vmul.f32 %v1071_v21, %v619_v32 }
 0x154   : > { %987 = vmatmul.msk.f32.vlgmr.msrb.gmra.mxu1 %vm627_vm6, %v621_v33  ;;  %988 = vmatmul.msk.f32.vlgmr.msrb.gmra.mxu2 %vm627_vm6, %v621_v33 }
 0x155   : > { %991 = vmatmul.msk.f32.vlgmr.msrb.gmra.mxu3 %vm627_vm6, %v622_v34  ;;  %992 = vmatmul.msk.f32.vlgmr.msra.gmra.mxu0 %vm627_vm6, %v622_v34 }
 0x15c   : > { %995 = vmatmul.msk.f32.vlgmr.msra.gmra.mxu1 %vm627_vm6, %v623_v35  ;;  %996 = vmatmul.msk.f32.vlgmr.msra.gmra.mxu2 %vm627_vm6, %v623_v35 }
 0x15d   : > { %999 = vmatmul.msk.f32.vlgmr.msra.gmra.mxu3 %vm627_vm6, %v624_v36  ;;  %1000 = vmatmul.msk.f32.vlgmr.msrb.gmra.mxu0 %vm627_vm6, %v624_v36 }
 0x1d1   : > { %v648_v37 = vpop.f32.mrf.mxu1 }
 0x1d2   : > { %v715_v38 = vpop.f32.mrf.mxu0  ;;  %v671_v43 = vmul.f32 %v648_v37, %v1377_v53 }
 0x1d7   : > { %v668_v39 = vpop.f32.mrf.mxu2 }
 0x1d8   : > { %v695_v40 = vpop.f32.mrf.mxu3  ;;  %v720_v46 = vadd.f32 %v715_v38, %v668_v39 }
 0x1d9   : > { %v718_v41 = vmul.f32 %v695_v40, %v1379_v54  ;;  %v744_v42 = vpop.f32.mrf.mxu1 }
 0x1da   : > { %v767_v45 = vmul.f32 %v744_v42, %v1381_v55  ;;  %v813_v51 = vpop.f32.mrf.mxu0 }
 0x1db   : > { %v719_v44 = vadd.f32 %v718_v41, %v671_v43 }
 0x1dd   : > { %v768_v50 = vadd.f32 %v767_v45, %v719_v44 }
 0x1df   : > { %v764_v47 = vpop.f32.mrf.mxu2 }
 0x1e0   : > { %v769_v48 = vadd.f32 %v764_v47, %v720_v46  ;;  %v793_v49 = vpop.f32.mrf.mxu3 }
 0x1e1   : > { %v816_v52 = vmul.f32 %v793_v49, %v1383_v56 }
 0x1e2   : > { %v818_v53 = vadd.f32 %v813_v51, %v769_v48 }
 0x1e3   : > { %v817_v54 = vadd.f32 %v816_v52, %v768_v50 }
 0x1e4   : > { %820 = vst [vmem:[%s243_s10] sm:$0xff] %v818_v53 }
 0x1e5   : > { %819 = vst [vmem:[%s236_s22] sm:$0xff] %v817_v54 }
 0x1e6   : > { %1131 = shalt.err (!%p1128_p8)
}
 0x1e7   : > { %1012 = dma.vmem_to_hbm [thread:$0]  (%p1275_p5), %s854_s11, 128, %s856_s12, %s827_s15  }
 0x1e8   : > { %s822_s8 = scalar_lea.sflag [#allocation4], %s1410_s17  ;;  %s1146_s9 = sshra.s32 %s1426_s14, 4  ;;  %s1147_s9 = int_to_ptr.hbm [resolvable:$true] %s1146_s9 }
 0x1e9   : > { %s1148_s10 = scalar_lea.hbm %s1147_s9, 8  ;;  %s1152_s23 = scalar_lea.hbm %s1474_s4, 16 }
 0x1ea   : > { %p1149_p9 = scmp.ne.s32.totalorder %s1147_s9, %s1148_s10  ;;  %p1153_p12 = scmp.lt.s32.totalorder %s1147_s9, %s1474_s4 }
 0x1eb   : > { %p1154_p13 = scmp.lt.s32.totalorder %s1152_s23, %s1148_s10 }
 0x1ec   : > { %p1150_p10 = pnand %p1149_p9, %p1275_p5 }
 0x1ed   : > { %p1155_p0 = por %p1154_p13, %p1153_p12 }
 0x1ee   : > { %p1151_p11 = pneg %p1150_p10 }
 0x1f0   : > { %p1156_p1 = pnand %p1155_p0, %p1151_p11 }
 0x1f2   : > { %1159 = shalt.err (!%p1156_p1)
}
 0x1f3   : > { %1011 = dma.vmem_to_hbm [thread:$0]  (%p1275_p5), %s1424_s13, 128, %s1426_s14, %s822_s8  }
 0x1f4 PF: > { %p1028_p2 = scmp.ge.s32.totalorder %s1202_s21, 2  ;;  %s867_s17 = sand.u32 1, %s1190_s18  }
 0x1f5   : > { %s868_s11 = scalar_lea.sflag [#allocation4], %s867_s17 }
 0x1f6   : > { %p1020_p3 = pnand %p1028_p2, %p1279_p6 }
 0x1f8   : > { %p1021_p4 = pneg %p1020_p3 }
 0x1fa   : > { %1181 = dma.done.wait (%p1021_p4), %s868_s11, 128  }
 0x1fb   : > { %1183 = vsyncadd (%p1021_p4), %s868_s11, 4294967168  ;;  %s878_s12 = scalar_lea.sflag [#allocation7], %s867_s17 }
 0x1fc   : > { %1185 = dma.done.wait (%p1021_p4), %s878_s12, 128  }
 0x1fd   : > { %1187 = vsyncadd (%p1021_p4), %s878_s12, 4294967168  ;;  %p20_p5 = scmp.ge.s32.totalorder %s1262_s24, 4   ;;  %s1478_s18 = smov %s1194_s19 }
 0x1fe   : > { %s1479_s19 = smov %s1198_s20  ;;  %s1480_s20 = smov %s1273_s27 }
 0x1ff   : > { %s1481_s21 = smov %s1262_s24  ;;  %22 = sbr.rel (!%p20_p5) target bundleno = 6 (0x6), region = 96 }
 0x204   :  { %884 = vsyncpa [#allocation3], 1 }
 0x205   :  { %886 = vsyncpa [#allocation3 + $0x1], 1 }
 0x206   :  { %887 = vsyncpa [#allocation4], 1 }
 0x207   :  { %889 = vsyncpa [#allocation4 + $0x1], 1 }
 0x208   :  { %890 = vsyncpa [#allocation7], 1 }
 0x209   :  { %892 = vsyncpa [#allocation7 + $0x1], 1 }

</bundles_post_ra>
